<compile_context>
chip_gen: v7x
topology: tpu7x:2x2x1
jax: 0.10.0
libtpu: 0.0.40
codegen_flags: <defaults>
</compile_context>

<pallas_src>
import functools
import math

import numpy as np
import jax
import jax.numpy as jnp
from jax.experimental import pallas as pl
from jax.experimental.pallas import tpu as pltpu

SQRT2 = math.sqrt(2.0)


def _round_up(x, m):
    return -(-x // m) * m


def _default_lane_multiple():
    """256 keeps the 256-wide MXU of v6e/v7x full; 128 elsewhere (v5e)."""
    try:
        kind = jax.devices()[0].device_kind.lower()
    except Exception:
        return 128
    return 256 if ("v6" in kind or "v7" in kind) else 128


def _pick_col_block(tlp, cap, base):
    """Largest multiple of `base` that divides tlp and is <= cap."""
    k = tlp // base
    m_max = max(1, min(k, max(1, cap // base)))
    for m in range(m_max, 0, -1):
        if k % m == 0:
            return m * base
    return base


def _gbr_kernel(x_ref, wz_ref, val_ref, out_ref, *, n_features, depth, fuse_lhs):
    """One (row-tile i, column-block j) grid step.

    x_ref:   (TM, 2F)    [mu | sd] sample tile
    wz_ref:  (D, 2F, CB) signed, threshold-scaled one-hot gather matrices
    val_ref: (1, CB)     leaf values * learning_rate * 0.5**D
    out_ref: (TM, 1)     per-sample forest output (resident across j)
    """
    @pl.when(pl.program_id(1) == 0)
    def _():
        out_ref[...] = jnp.zeros_like(out_ref)

    x = x_ref[...]                           # (TM, 2F)
    mu = x[:, :n_features]                   # (TM, F)
    sd = x[:, n_features:]                   # (TM, F)
    # Hoisted per-sample scale: one exact f32 divide per (TM, F) tile.
    # NOTE: assumes sd > 0 (as torch.distributions.Normal requires); sd == 0
    # propagates inf/nan like the reference — no silent clamping.
    a = 1.0 / (sd * SQRT2)                   # (TM, F)
    b = mu * a                               # (TM, F)
    if fuse_lhs:
        ab = jnp.concatenate([a, b], axis=-1)    # (TM, 2F)

    # Per-level loop keeps live temporaries at (TM, CB); same MXU work as the
    # fully-materialized (TM, D*TLp) form, ~D x smaller peak VMEM.
    prob = None
    for d in range(depth):
        # z = sign_d * (thr_d - mu_f) / (sd_f * sqrt(2)) in ONE matmul per
        # level.  Default matmul precision met the 1e-5 tolerance in testing;
        # use precision=jax.lax.Precision.HIGHEST if a tighter budget is needed.
        if fuse_lhs:
            z = jnp.dot(ab, wz_ref[d], preferred_element_type=jnp.float32)
        else:  # fallback path: two K=F matmuls (one extra MXU pass per level)
            z = (jnp.dot(a, wz_ref[d, :n_features, :],
                         preferred_element_type=jnp.float32)
                 + jnp.dot(b, wz_ref[d, n_features:, :],
                           preferred_element_type=jnp.float32))
        # TODO(synk): confirm from a bundle dump whether erf lowers to EUP or a
        # VALU polynomial; it is the expected ceiling on the (TM, CB) region.
        wl = 1.0 + jax.lax.erf(z)            # = 2*Phi; 0.5**D folded into vals
        prob = wl if prob is None else prob * wl

    # Leaf-value reduce on VPU/XLU (exact f32) instead of an N=1 MXU matmul.
    out_ref[...] += jnp.sum(prob * val_ref[...], axis=-1, keepdims=True)


def pack_forest(feats, thresholds, values, n_features, learning_rate, *,
                lane_multiple=None):
    """Bake the static complete-binary-tree topology into packed parameters.

    feats: (T, I) int split feature per internal node (heap order)
    thresholds: (T, I) float thresholds, values: (T, L) leaf values.
    Returns (wz (D, 2F, TLp), vals (1, TLp), D, TLp) with learning_rate*0.5**D
    folded into the leaf values and sign/threshold folded into wz.
    """
    if lane_multiple is None:
        lane_multiple = _default_lane_multiple()
    feats = np.asarray(feats)
    thresholds = np.asarray(thresholds, np.float32)
    values = np.asarray(values, np.float32)
    T, I = feats.shape
    L = values.shape[1]
    D = int(round(math.log2(L)))
    assert (1 << D) == L and I == L - 1, "expects complete trees of depth D"
    tlp = _round_up(T * L, lane_multiple)

    wz = np.zeros((D, 2 * n_features, tlp), np.float32)
    vals = np.zeros((1, tlp), np.float32)
    leaf_scale = learning_rate * (0.5 ** D)
    for t in range(T):
        for l in range(L):
            col = t * L + l
            vals[0, col] = values[t, l] * leaf_scale
            for d in range(D):
                node = (1 << d) - 1 + (l >> (D - d))        # ancestor at level d
                f = int(feats[t, node])
                sgn = -1.0 if ((l >> (D - 1 - d)) & 1) else 1.0  # +left / -right
                wz[d, f, col] = sgn * thresholds[t, node]
                wz[d, n_features + f, col] = -sgn
    return jnp.asarray(wz), jnp.asarray(vals), D, tlp


def gbr_predict(X, wz, vals, *, depth, tlp, tile_rows=512, col_block_cap=4096,
                vmem_budget_bytes=40 * (1 << 20)):
    """X: (N, 2F); wz: (D, 2F, TLp); vals: (1, TLp).  Returns (N, 1) f32."""
    N, two_f = X.shape
    F = two_f // 2
    assert wz.shape == (depth, two_f, tlp) and vals.shape == (1, tlp)

    # Row tile: multiple of 8 sublanes; split into >=2 tiles when possible so
    # the "parallel" grid axis can shard across v7x's two TensorCores.
    tm = min(tile_rows, max(8, _round_up(-(-N // 2), 8)))

    # Column block over the packed (tree, leaf) lane axis: bounds the working
    # set independently of forest size.
    base = 256 if tlp % 256 == 0 else 128
    cb = _pick_col_block(tlp, col_block_cap, base)

    def vmem_estimate(tm_, cb_, param_bufs):
        return (2 * tm_ * two_f * 4                      # X tile (double-buffered)
                + param_bufs * depth * two_f * cb_ * 4   # Wz block
                + param_bufs * cb_ * 4                   # leaf values block
                + 2 * tm_ * 4                            # output block
                + 4 * tm_ * cb_ * 4)                     # live (TM, CB) temporaries

    while vmem_estimate(tm, cb, 2) > vmem_budget_bytes and cb > base:
        cb = _pick_col_block(tlp, cb // 2, base)
    while vmem_estimate(tm, cb, 2) > vmem_budget_bytes and tm > 8:
        tm = max(8, _round_up(tm // 2, 8))

    n_pad = _round_up(N, tm)
    n_col_blocks = tlp // cb
    grid = (n_pad // tm, n_col_blocks)
    vmem_limit = int(min(max(2 * vmem_estimate(tm, cb, 2), 32 << 20), 48 << 20))

    # Pad the sample tail with (mu=0, sd=1) rows; sliced off before return.
    X = X.astype(jnp.float32)
    if n_pad != N:
        pad = jnp.concatenate([jnp.zeros((n_pad - N, F), jnp.float32),
                               jnp.ones((n_pad - N, F), jnp.float32)], axis=1)
        Xp = jnp.concatenate([X, pad], axis=0)
    else:
        Xp = X

    def build(fuse_lhs, single_buffer_params):
        def pspec(shape, imap):
            # Grid-invariant params: single-buffer to halve their VMEM cost.
            if single_buffer_params:
                return pl.BlockSpec(shape, imap, pipeline_mode=pl.Buffered(1))
            return pl.BlockSpec(shape, imap)

        kernel = functools.partial(_gbr_kernel, n_features=F, depth=depth,
                                   fuse_lhs=fuse_lhs)
        return pl.pallas_call(
            kernel,
            out_shape=jax.ShapeDtypeStruct((n_pad, 1), jnp.float32),
            grid=grid,
            in_specs=[
                pl.BlockSpec((tm, two_f), lambda i, j: (i, 0)),
                pspec((depth, two_f, cb), lambda i, j: (0, 0, j)),
                pspec((1, cb), lambda i, j: (0, j)),
            ],
            out_specs=pl.BlockSpec((tm, 1), lambda i, j: (i, 0)),
            compiler_params=pltpu.CompilerParams(
                dimension_semantics=("parallel", "arbitrary"),
                vmem_limit_bytes=vmem_limit),
        )(Xp, wz, vals)

    # Preferred config first; degrade gracefully only if the installed Pallas
    # rejects single-buffering (pl.Buffered(1)) or minor-dim concatenation.
    single_buffer = (n_col_blocks == 1) and hasattr(pl, "Buffered")
    attempts = [(True, single_buffer)]
    if single_buffer:
        attempts.append((True, False))
    attempts.append((False, False))
    last_err = None
    for fuse_lhs, sb in attempts:
        try:
            return build(fuse_lhs, sb)[:N]
        except Exception as e:  # version-dependent lowering support
            last_err = e
    raise last_err


if __name__ == "__main__":
    # ---- deterministic synthetic "fitted" forest + inputs -------------------
    N, F, T, D = 8, 4, 3, 2                 # samples, features, trees, depth
    I, L = (1 << D) - 1, 1 << D             # internal nodes / leaves per tree
    lr = 0.1                                # gbr.learning_rate

    key = jax.random.PRNGKey(0)
    k1, k2, k3, k4, k5 = jax.random.split(key, 5)
    feats = jax.random.randint(k1, (T, I), 0, F)            # split feature/node
    thr = jax.random.normal(k2, (T, I), jnp.float32)        # split thresholds
    values = jax.random.normal(k3, (T, L), jnp.float32)     # leaf values
    mu = jax.random.normal(k4, (N, F), jnp.float32)
    sd = jnp.abs(jax.random.normal(k5, (N, F), jnp.float32)) + 0.1
    X = jnp.concatenate([mu, sd], axis=1)                   # (N, 2F)

    wz, vals, depth, tlp = pack_forest(feats, thr, values, F, lr)
    out = gbr_predict(X, wz, vals, depth=depth, tlp=tlp)
    out = jax.block_until_ready(out)

    # ---- plain-JAX/numpy reference (recursive, mirrors the torch module) ----
    from jax.scipy.special import erf as jerf
    feats_np = np.asarray(feats)
    thr_np = np.asarray(thr)
    vals_np = np.asarray(values)
    mu_np = np.asarray(mu)
    sd_np = np.asarray(sd)

    def phi(z):
        return 0.5 * (1.0 + np.asarray(jerf(jnp.asarray(z) / SQRT2)))

    def rec(t, d, p):
        if d == D:                                   # leaf
            return np.tile(vals_np[t, p], (N, 1))
        idx = (1 << d) - 1 + p
        f = int(feats_np[t, idx])
        w = phi((thr_np[t, idx] - mu_np[:, f]) / sd_np[:, f])[:, None]
        return w * rec(t, d + 1, 2 * p) + (1.0 - w) * rec(t, d + 1, 2 * p + 1)

    ref = sum(rec(t, 0, 0) for t in range(T)) * lr
    np.testing.assert_allclose(np.asarray(out), ref, rtol=1e-5, atol=1e-5)
    print("KERNEL_OK")
</pallas_src>

<mosaic_0001>
module attributes {stable_mosaic.version = 11 : i64} {
  func.func @_gbr_kernel(%arg0: i32, %arg1: i32, %arg2: memref<8x8xf32, #tpu.memory_space<vmem>>, %arg3: memref<2x8x128xf32, #tpu.memory_space<vmem>>, %arg4: memref<1x128xf32, #tpu.memory_space<vmem>>, %arg5: memref<8x1xf32, #tpu.memory_space<vmem>>) attributes {dimension_semantics = [#tpu.dimension_semantics<parallel>, #tpu.dimension_semantics<arbitrary>], iteration_bounds = array<i64: 1, 1>, scalar_prefetch = 0 : i64, scratch_operands = 0 : i64, tpu.core_type = #tpu.core_type<tc>, window_params = [{transform_indices = @transform_0, window_bounds = array<i64: 8, 8>}, {pipeline_mode = #tpu.pipeline_mode<synchronous>, transform_indices = @transform_1, window_bounds = array<i64: 2, 8, 128>}, {pipeline_mode = #tpu.pipeline_mode<synchronous>, transform_indices = @transform_2, window_bounds = array<i64: 1, 128>}, {transform_indices = @transform_3, window_bounds = array<i64: 8, 1>}]} {
    %c0_i32 = arith.constant 0 : i32
    %0 = arith.cmpi eq, %arg1, %c0_i32 : i32
    %1 = arith.extui %0 : i1 to i32
    %c0_i32_0 = arith.constant 0 : i32
    %2 = arith.cmpi ne, %1, %c0_i32_0 : i32
    scf.if %2 {
      %cst_19 = arith.constant 0.000000e+00 : f32
      %33 = vector.broadcast %cst_19 : f32 to vector<8x1xf32>
      %c0_20 = arith.constant 0 : index
      %c0_21 = arith.constant 0 : index
      %34 = vector.load %arg5[%c0_20, %c0_21] : memref<8x1xf32, #tpu.memory_space<vmem>>, vector<8x1xf32>
      tpu.vector_store %arg5[%c0_20, %c0_21], %33 {strides = array<i32>} : memref<8x1xf32, #tpu.memory_space<vmem>>, vector<8x1xf32>,
    } else {
    }
    %c0 = arith.constant 0 : index
    %c0_1 = arith.constant 0 : index
    %3 = vector.load %arg2[%c0, %c0_1] : memref<8x8xf32, #tpu.memory_space<vmem>>, vector<8x8xf32>
    %4 = vector.extract_strided_slice %3 {offsets = [0, 0], sizes = [8, 4], strides = [1, 1]} : vector<8x8xf32> to vector<8x4xf32>
    %5 = vector.extract_strided_slice %3 {offsets = [0, 4], sizes = [8, 4], strides = [1, 1]} : vector<8x8xf32> to vector<8x4xf32>
    %cst = arith.constant 1.41421354 : f32
    %6 = vector.broadcast %cst : f32 to vector<8x4xf32>
    %7 = arith.mulf %5, %6 : vector<8x4xf32>
    %cst_2 = arith.constant 1.000000e+00 : f32
    %8 = vector.broadcast %cst_2 : f32 to vector<8x4xf32>
    %9 = arith.divf %8, %7 : vector<8x4xf32>
    %10 = arith.mulf %4, %9 : vector<8x4xf32>
    %11 = tpu.concatenate %9, %10 in 1 : vector<8x4xf32>, vector<8x4xf32> -> vector<8x8xf32>
    %c0_3 = arith.constant 0 : index
    %c0_4 = arith.constant 0 : index
    %c0_5 = arith.constant 0 : index
    %12 = vector.load %arg3[%c0_3, %c0_4, %c0_5] : memref<2x8x128xf32, #tpu.memory_space<vmem>>, vector<1x8x128xf32>
    %13 = vector.shape_cast %12 : vector<1x8x128xf32> to vector<8x128xf32>
    %cst_6 = arith.constant dense<0.000000e+00> : vector<8x128xf32>
    %14 = tpu.matmul %11, %13, %cst_6 {dimension_numbers = #tpu.dot_dimension_numbers<[1], [0], [0], [1], [0, 0, 1, 1], [], []>} : vector<8x8xf32>, vector<8x128xf32>, vector<8x128xf32> -> vector<8x128xf32>
    %15 = math.erf %14 : vector<8x128xf32>
    %cst_7 = arith.constant 1.000000e+00 : f32
    %16 = vector.broadcast %cst_7 : f32 to vector<8x128xf32>
    %17 = arith.addf %16, %15 : vector<8x128xf32>
    %c1 = arith.constant 1 : index
    %c0_8 = arith.constant 0 : index
    %c0_9 = arith.constant 0 : index
    %18 = vector.load %arg3[%c1, %c0_8, %c0_9] : memref<2x8x128xf32, #tpu.memory_space<vmem>>, vector<1x8x128xf32>
    %19 = vector.shape_cast %18 : vector<1x8x128xf32> to vector<8x128xf32>
    %cst_10 = arith.constant dense<0.000000e+00> : vector<8x128xf32>
    %20 = tpu.matmul %11, %19, %cst_10 {dimension_numbers = #tpu.dot_dimension_numbers<[1], [0], [0], [1], [0, 0, 1, 1], [], []>} : vector<8x8xf32>, vector<8x128xf32>, vector<8x128xf32> -> vector<8x128xf32>
    %21 = math.erf %20 : vector<8x128xf32>
    %cst_11 = arith.constant 1.000000e+00 : f32
    %22 = vector.broadcast %cst_11 : f32 to vector<8x128xf32>
    %23 = arith.addf %22, %21 : vector<8x128xf32>
    %24 = arith.mulf %17, %23 : vector<8x128xf32>
    %c0_12 = arith.constant 0 : index
    %c0_13 = arith.constant 0 : index
    %25 = vector.load %arg5[%c0_12, %c0_13] : memref<8x1xf32, #tpu.memory_space<vmem>>, vector<8x1xf32>
    %c0_14 = arith.constant 0 : index
    %c0_15 = arith.constant 0 : index
    %26 = vector.load %arg4[%c0_14, %c0_15] : memref<1x128xf32, #tpu.memory_space<vmem>>, vector<1x128xf32>
    %27 = vector.broadcast %26 : vector<1x128xf32> to vector<8x128xf32>
    %28 = arith.mulf %24, %27 : vector<8x128xf32>
    %cst_16 = arith.constant dense<0.000000e+00> : vector<8xf32>
    %29 = vector.multi_reduction <add>, %28, %cst_16 [1] : vector<8x128xf32> to vector<8xf32>
    %30 = vector.shape_cast %29 : vector<8xf32> to vector<8x1xf32>
    %31 = arith.addf %25, %30 : vector<8x1xf32>
    %c0_17 = arith.constant 0 : index
    %c0_18 = arith.constant 0 : index
    %32 = vector.load %arg5[%c0_17, %c0_18] : memref<8x1xf32, #tpu.memory_space<vmem>>, vector<8x1xf32>
    tpu.vector_store %arg5[%c0_17, %c0_18], %31 {strides = array<i32>} : memref<8x1xf32, #tpu.memory_space<vmem>>, vector<8x1xf32>,
    return
  }
  func.func @transform_0(%arg0: i32, %arg1: i32) -> (i32, i32) {
    %c0_i32 = arith.constant 0 : i32
    %c0_i32_0 = arith.constant 0 : i32
    return %arg0, %c0_i32 : i32, i32
  }
  func.func @transform_1(%arg0: i32, %arg1: i32) -> (i32, i32, i32) {
    %c0_i32 = arith.constant 0 : i32
    %c0_i32_0 = arith.constant 0 : i32
    %c0_i32_1 = arith.constant 0 : i32
    return %c0_i32, %c0_i32_0, %arg1 : i32, i32, i32
  }
  func.func @transform_2(%arg0: i32, %arg1: i32) -> (i32, i32) {
    %c0_i32 = arith.constant 0 : i32
    %c0_i32_0 = arith.constant 0 : i32
    return %c0_i32, %arg1 : i32, i32
  }
  func.func @transform_3(%arg0: i32, %arg1: i32) -> (i32, i32) {
    %c0_i32 = arith.constant 0 : i32
    %c0_i32_0 = arith.constant 0 : i32
    return %arg0, %c0_i32 : i32, i32
  }
}

module attributes {stable_mosaic.version = 11 : i64} {
  func.func @_gbr_kernel(%arg0: i32, %arg1: i32, %arg2: memref<8x8xf32, #tpu.memory_space<vmem>>, %arg3: memref<2x8x128xf32, #tpu.memory_space<vmem>>, %arg4: memref<1x128xf32, #tpu.memory_space<vmem>>, %arg5: memref<8x1xf32, #tpu.memory_space<vmem>>) attributes {dimension_semantics = [#tpu.dimension_semantics<parallel>, #tpu.dimension_semantics<arbitrary>], iteration_bounds = array<i64: 1, 1>, scalar_prefetch = 0 : i64, scratch_operands = 0 : i64, tpu.core_type = #tpu.core_type<tc>, window_params = [{transform_indices = @transform_0, window_bounds = array<i64: 8, 8>}, {transform_indices = @transform_1, window_bounds = array<i64: 2, 8, 128>}, {transform_indices = @transform_2, window_bounds = array<i64: 1, 128>}, {transform_indices = @transform_3, window_bounds = array<i64: 8, 1>}]} {
    %c0_i32 = arith.constant 0 : i32
    %0 = arith.cmpi eq, %arg1, %c0_i32 : i32
    %1 = arith.extui %0 : i1 to i32
    %c0_i32_0 = arith.constant 0 : i32
    %2 = arith.cmpi ne, %1, %c0_i32_0 : i32
    scf.if %2 {
      %cst_19 = arith.constant 0.000000e+00 : f32
      %33 = vector.broadcast %cst_19 : f32 to vector<8x1xf32>
      %c0_20 = arith.constant 0 : index
      %c0_21 = arith.constant 0 : index
      %34 = vector.load %arg5[%c0_20, %c0_21] : memref<8x1xf32, #tpu.memory_space<vmem>>, vector<8x1xf32>
      tpu.vector_store %arg5[%c0_20, %c0_21], %33 {strides = array<i32>} : memref<8x1xf32, #tpu.memory_space<vmem>>, vector<8x1xf32>,
    } else {
    }
    %c0 = arith.constant 0 : index
    %c0_1 = arith.constant 0 : index
    %3 = vector.load %arg2[%c0, %c0_1] : memref<8x8xf32, #tpu.memory_space<vmem>>, vector<8x8xf32>
    %4 = vector.extract_strided_slice %3 {offsets = [0, 0], sizes = [8, 4], strides = [1, 1]} : vector<8x8xf32> to vector<8x4xf32>
    %5 = vector.extract_strided_slice %3 {offsets = [0, 4], sizes = [8, 4], strides = [1, 1]} : vector<8x8xf32> to vector<8x4xf32>
    %cst = arith.constant 1.41421354 : f32
    %6 = vector.broadcast %cst : f32 to vector<8x4xf32>
    %7 = arith.mulf %5, %6 : vector<8x4xf32>
    %cst_2 = arith.constant 1.000000e+00 : f32
    %8 = vector.broadcast %cst_2 : f32 to vector<8x4xf32>
    %9 = arith.divf %8, %7 : vector<8x4xf32>
    %10 = arith.mulf %4, %9 : vector<8x4xf32>
    %11 = tpu.concatenate %9, %10 in 1 : vector<8x4xf32>, vector<8x4xf32> -> vector<8x8xf32>
    %c0_3 = arith.constant 0 : index
    %c0_4 = arith.constant 0 : index
    %c0_5 = arith.constant 0 : index
    %12 = vector.load %arg3[%c0_3, %c0_4, %c0_5] : memref<2x8x128xf32, #tpu.memory_space<vmem>>, vector<1x8x128xf32>
    %13 = vector.shape_cast %12 : vector<1x8x128xf32> to vector<8x128xf32>
    %cst_6 = arith.constant dense<0.000000e+00> : vector<8x128xf32>
    %14 = tpu.matmul %11, %13, %cst_6 {dimension_numbers = #tpu.dot_dimension_numbers<[1], [0], [0], [1], [0, 0, 1, 1], [], []>} : vector<8x8xf32>, vector<8x128xf32>, vector<8x128xf32> -> vector<8x128xf32>
    %15 = math.erf %14 : vector<8x128xf32>
    %cst_7 = arith.constant 1.000000e+00 : f32
    %16 = vector.broadcast %cst_7 : f32 to vector<8x128xf32>
    %17 = arith.addf %16, %15 : vector<8x128xf32>
    %c1 = arith.constant 1 : index
    %c0_8 = arith.constant 0 : index
    %c0_9 = arith.constant 0 : index
    %18 = vector.load %arg3[%c1, %c0_8, %c0_9] : memref<2x8x128xf32, #tpu.memory_space<vmem>>, vector<1x8x128xf32>
    %19 = vector.shape_cast %18 : vector<1x8x128xf32> to vector<8x128xf32>
    %cst_10 = arith.constant dense<0.000000e+00> : vector<8x128xf32>
    %20 = tpu.matmul %11, %19, %cst_10 {dimension_numbers = #tpu.dot_dimension_numbers<[1], [0], [0], [1], [0, 0, 1, 1], [], []>} : vector<8x8xf32>, vector<8x128xf32>, vector<8x128xf32> -> vector<8x128xf32>
    %21 = math.erf %20 : vector<8x128xf32>
    %cst_11 = arith.constant 1.000000e+00 : f32
    %22 = vector.broadcast %cst_11 : f32 to vector<8x128xf32>
    %23 = arith.addf %22, %21 : vector<8x128xf32>
    %24 = arith.mulf %17, %23 : vector<8x128xf32>
    %c0_12 = arith.constant 0 : index
    %c0_13 = arith.constant 0 : index
    %25 = vector.load %arg5[%c0_12, %c0_13] : memref<8x1xf32, #tpu.memory_space<vmem>>, vector<8x1xf32>
    %c0_14 = arith.constant 0 : index
    %c0_15 = arith.constant 0 : index
    %26 = vector.load %arg4[%c0_14, %c0_15] : memref<1x128xf32, #tpu.memory_space<vmem>>, vector<1x128xf32>
    %27 = vector.broadcast %26 : vector<1x128xf32> to vector<8x128xf32>
    %28 = arith.mulf %24, %27 : vector<8x128xf32>
    %cst_16 = arith.constant dense<0.000000e+00> : vector<8xf32>
    %29 = vector.multi_reduction <add>, %28, %cst_16 [1] : vector<8x128xf32> to vector<8xf32>
    %30 = vector.shape_cast %29 : vector<8xf32> to vector<8x1xf32>
    %31 = arith.addf %25, %30 : vector<8x1xf32>
    %c0_17 = arith.constant 0 : index
    %c0_18 = arith.constant 0 : index
    %32 = vector.load %arg5[%c0_17, %c0_18] : memref<8x1xf32, #tpu.memory_space<vmem>>, vector<8x1xf32>
    tpu.vector_store %arg5[%c0_17, %c0_18], %31 {strides = array<i32>} : memref<8x1xf32, #tpu.memory_space<vmem>>, vector<8x1xf32>,
    return
  }
  func.func @transform_0(%arg0: i32, %arg1: i32) -> (i32, i32) {
    %c0_i32 = arith.constant 0 : i32
    %c0_i32_0 = arith.constant 0 : i32
    return %arg0, %c0_i32 : i32, i32
  }
  func.func @transform_1(%arg0: i32, %arg1: i32) -> (i32, i32, i32) {
    %c0_i32 = arith.constant 0 : i32
    %c0_i32_0 = arith.constant 0 : i32
    %c0_i32_1 = arith.constant 0 : i32
    return %c0_i32, %c0_i32_0, %arg1 : i32, i32, i32
  }
  func.func @transform_2(%arg0: i32, %arg1: i32) -> (i32, i32) {
    %c0_i32 = arith.constant 0 : i32
    %c0_i32_0 = arith.constant 0 : i32
    return %c0_i32, %arg1 : i32, i32
  }
  func.func @transform_3(%arg0: i32, %arg1: i32) -> (i32, i32) {
    %c0_i32 = arith.constant 0 : i32
    %c0_i32_0 = arith.constant 0 : i32
    return %arg0, %c0_i32 : i32, i32
  }
}

module attributes {stable_mosaic.version = 11 : i64} {
  func.func @_gbr_kernel(%arg0: i32, %arg1: i32, %arg2: memref<8x8xf32, #tpu.memory_space<vmem>>, %arg3: memref<2x8x128xf32, #tpu.memory_space<vmem>>, %arg4: memref<1x128xf32, #tpu.memory_space<vmem>>, %arg5: memref<8x1xf32, #tpu.memory_space<vmem>>) attributes {dimension_semantics = [#tpu.dimension_semantics<parallel>, #tpu.dimension_semantics<arbitrary>], iteration_bounds = array<i64: 1, 1>, scalar_prefetch = 0 : i64, scratch_operands = 0 : i64, tpu.core_type = #tpu.core_type<tc>, window_params = [{transform_indices = @transform_0, window_bounds = array<i64: 8, 8>}, {transform_indices = @transform_1, window_bounds = array<i64: 2, 8, 128>}, {transform_indices = @transform_2, window_bounds = array<i64: 1, 128>}, {transform_indices = @transform_3, window_bounds = array<i64: 8, 1>}]} {
    %c0_i32 = arith.constant 0 : i32
    %0 = arith.cmpi eq, %arg1, %c0_i32 : i32
    %1 = arith.extui %0 : i1 to i32
    %c0_i32_0 = arith.constant 0 : i32
    %2 = arith.cmpi ne, %1, %c0_i32_0 : i32
    scf.if %2 {
      %cst_26 = arith.constant 0.000000e+00 : f32
      %40 = vector.broadcast %cst_26 : f32 to vector<8x1xf32>
      %c0_27 = arith.constant 0 : index
      %c0_28 = arith.constant 0 : index
      %41 = vector.load %arg5[%c0_27, %c0_28] : memref<8x1xf32, #tpu.memory_space<vmem>>, vector<8x1xf32>
      tpu.vector_store %arg5[%c0_27, %c0_28], %40 {strides = array<i32>} : memref<8x1xf32, #tpu.memory_space<vmem>>, vector<8x1xf32>,
    } else {
    }
    %c0 = arith.constant 0 : index
    %c0_1 = arith.constant 0 : index
    %3 = vector.load %arg2[%c0, %c0_1] : memref<8x8xf32, #tpu.memory_space<vmem>>, vector<8x8xf32>
    %4 = vector.extract_strided_slice %3 {offsets = [0, 0], sizes = [8, 4], strides = [1, 1]} : vector<8x8xf32> to vector<8x4xf32>
    %5 = vector.extract_strided_slice %3 {offsets = [0, 4], sizes = [8, 4], strides = [1, 1]} : vector<8x8xf32> to vector<8x4xf32>
    %cst = arith.constant 1.41421354 : f32
    %6 = vector.broadcast %cst : f32 to vector<8x4xf32>
    %7 = arith.mulf %5, %6 : vector<8x4xf32>
    %cst_2 = arith.constant 1.000000e+00 : f32
    %8 = vector.broadcast %cst_2 : f32 to vector<8x4xf32>
    %9 = arith.divf %8, %7 : vector<8x4xf32>
    %10 = arith.mulf %4, %9 : vector<8x4xf32>
    %c0_3 = arith.constant 0 : index
    %c0_4 = arith.constant 0 : index
    %c0_5 = arith.constant 0 : index
    %11 = vector.load %arg3[%c0_3, %c0_4, %c0_5] : memref<2x8x128xf32, #tpu.memory_space<vmem>>, vector<1x4x128xf32>
    %12 = vector.shape_cast %11 : vector<1x4x128xf32> to vector<4x128xf32>
    %cst_6 = arith.constant dense<0.000000e+00> : vector<8x128xf32>
    %13 = tpu.matmul %9, %12, %cst_6 {dimension_numbers = #tpu.dot_dimension_numbers<[1], [0], [0], [1], [0, 0, 1, 1], [], []>} : vector<8x4xf32>, vector<4x128xf32>, vector<8x128xf32> -> vector<8x128xf32>
    %c0_7 = arith.constant 0 : index
    %c4 = arith.constant 4 : index
    %c0_8 = arith.constant 0 : index
    %14 = vector.load %arg3[%c0_7, %c4, %c0_8] : memref<2x8x128xf32, #tpu.memory_space<vmem>>, vector<1x4x128xf32>
    %15 = vector.shape_cast %14 : vector<1x4x128xf32> to vector<4x128xf32>
    %cst_9 = arith.constant dense<0.000000e+00> : vector<8x128xf32>
    %16 = tpu.matmul %10, %15, %cst_9 {dimension_numbers = #tpu.dot_dimension_numbers<[1], [0], [0], [1], [0, 0, 1, 1], [], []>} : vector<8x4xf32>, vector<4x128xf32>, vector<8x128xf32> -> vector<8x128xf32>
    %17 = arith.addf %13, %16 : vector<8x128xf32>
    %18 = math.erf %17 : vector<8x128xf32>
    %cst_10 = arith.constant 1.000000e+00 : f32
    %19 = vector.broadcast %cst_10 : f32 to vector<8x128xf32>
    %20 = arith.addf %19, %18 : vector<8x128xf32>
    %c1 = arith.constant 1 : index
    %c0_11 = arith.constant 0 : index
    %c0_12 = arith.constant 0 : index
    %21 = vector.load %arg3[%c1, %c0_11, %c0_12] : memref<2x8x128xf32, #tpu.memory_space<vmem>>, vector<1x4x128xf32>
    %22 = vector.shape_cast %21 : vector<1x4x128xf32> to vector<4x128xf32>
    %cst_13 = arith.constant dense<0.000000e+00> : vector<8x128xf32>
    %23 = tpu.matmul %9, %22, %cst_13 {dimension_numbers = #tpu.dot_dimension_numbers<[1], [0], [0], [1], [0, 0, 1, 1], [], []>} : vector<8x4xf32>, vector<4x128xf32>, vector<8x128xf32> -> vector<8x128xf32>
    %c1_14 = arith.constant 1 : index
    %c4_15 = arith.constant 4 : index
    %c0_16 = arith.constant 0 : index
    %24 = vector.load %arg3[%c1_14, %c4_15, %c0_16] : memref<2x8x128xf32, #tpu.memory_space<vmem>>, vector<1x4x128xf32>
    %25 = vector.shape_cast %24 : vector<1x4x128xf32> to vector<4x128xf32>
    %cst_17 = arith.constant dense<0.000000e+00> : vector<8x128xf32>
    %26 = tpu.matmul %10, %25, %cst_17 {dimension_numbers = #tpu.dot_dimension_numbers<[1], [0], [0], [1], [0, 0, 1, 1], [], []>} : vector<8x4xf32>, vector<4x128xf32>, vector<8x128xf32> -> vector<8x128xf32>
    %27 = arith.addf %23, %26 : vector<8x128xf32>
    %28 = math.erf %27 : vector<8x128xf32>
    %cst_18 = arith.constant 1.000000e+00 : f32
    %29 = vector.broadcast %cst_18 : f32 to vector<8x128xf32>
    %30 = arith.addf %29, %28 : vector<8x128xf32>
    %31 = arith.mulf %20, %30 : vector<8x128xf32>
    %c0_19 = arith.constant 0 : index
    %c0_20 = arith.constant 0 : index
    %32 = vector.load %arg5[%c0_19, %c0_20] : memref<8x1xf32, #tpu.memory_space<vmem>>, vector<8x1xf32>
    %c0_21 = arith.constant 0 : index
    %c0_22 = arith.constant 0 : index
    %33 = vector.load %arg4[%c0_21, %c0_22] : memref<1x128xf32, #tpu.memory_space<vmem>>, vector<1x128xf32>
    %34 = vector.broadcast %33 : vector<1x128xf32> to vector<8x128xf32>
    %35 = arith.mulf %31, %34 : vector<8x128xf32>
    %cst_23 = arith.constant dense<0.000000e+00> : vector<8xf32>
    %36 = vector.multi_reduction <add>, %35, %cst_23 [1] : vector<8x128xf32> to vector<8xf32>
    %37 = vector.shape_cast %36 : vector<8xf32> to vector<8x1xf32>
    %38 = arith.addf %32, %37 : vector<8x1xf32>
    %c0_24 = arith.constant 0 : index
    %c0_25 = arith.constant 0 : index
    %39 = vector.load %arg5[%c0_24, %c0_25] : memref<8x1xf32, #tpu.memory_space<vmem>>, vector<8x1xf32>
    tpu.vector_store %arg5[%c0_24, %c0_25], %38 {strides = array<i32>} : memref<8x1xf32, #tpu.memory_space<vmem>>, vector<8x1xf32>,
    return
  }
  func.func @transform_0(%arg0: i32, %arg1: i32) -> (i32, i32) {
    %c0_i32 = arith.constant 0 : i32
    %c0_i32_0 = arith.constant 0 : i32
    return %arg0, %c0_i32 : i32, i32
  }
  func.func @transform_1(%arg0: i32, %arg1: i32) -> (i32, i32, i32) {
    %c0_i32 = arith.constant 0 : i32
    %c0_i32_0 = arith.constant 0 : i32
    %c0_i32_1 = arith.constant 0 : i32
    return %c0_i32, %c0_i32_0, %arg1 : i32, i32, i32
  }
  func.func @transform_2(%arg0: i32, %arg1: i32) -> (i32, i32) {
    %c0_i32 = arith.constant 0 : i32
    %c0_i32_0 = arith.constant 0 : i32
    return %c0_i32, %arg1 : i32, i32
  }
  func.func @transform_3(%arg0: i32, %arg1: i32) -> (i32, i32) {
    %c0_i32 = arith.constant 0 : i32
    %c0_i32_0 = arith.constant 0 : i32
    return %arg0, %c0_i32 : i32, i32
  }
}

</mosaic_0001>

<bundles_post_ra>
// kernel: tpu_custom_call.1
= control target key start
LH: loop header
LB: loop body
LE: loop exit
PB: predicated region body
PF: predicated region fallthrough
CT: control target
= control target key end

     0   :  { %8 = vsyncpa [#allocation3], 0  ;;  %s385_s0 = inlined_call_operand.hbm [shape: f32[8,8], index: 0, kind: input, shape index: {}]   ;;  %s386_s1 = inlined_call_operand.hbm [shape: f32[2,8,128], index: 1, kind: input, shape index: {}]   ;;  %s387_s2 = inlined_call_operand.vmem [shape: f32[1,128], index: 2, kind: input, shape index: {}]   ;;  %s388_s3 = inlined_call_operand.vmem [shape: f32[8,1], index: 3, kind: output, shape index: {}]  }
   0x1   :  { %9 = vsyncpa [#allocation5], 0  ;;  %s312_s12 = smov [#allocation2]   ;;  %s313_s14 = smov [#allocation4]  }
   0x2   :  { %s16_s13 = sshll.u32 %s312_s12, 4  ;;  %s25_s15 = sshll.u32 %s313_s14, 4  ;;  %s17_s13 = int_to_ptr.vmem [resolvable:$true] %s16_s13  ;;  %s340_s15 = int_to_ptr.vmem [resolvable:$true] %s25_s15 }
   0x3   :  { %s264_s18 = scalar_lea.hbm %s385_s0, 128 }
   0x4   :  { %p265_p0 = scmp.ne.s32.totalorder %s385_s0, %s264_s18  ;;  %p268_p1 = scmp.lt.u32.totalorder %s264_s18, %s385_s0 }
   0x6   :  { %p270_p2 = pnand %p268_p1, %p265_p0 }
   0x8   :  { %273 = shalt.err (!%p270_p2)
}
   0x9   :  { %s274_s23 = scalar_lea.vmem %s17_s13, 128  ;;  %p279_p4 = scmp.lt.s32.totalorder %s17_s13, %s17_s13 }
   0xa   :  { %p275_p3 = scmp.ne.s32.totalorder %s17_s13, %s274_s23  ;;  %p280_p5 = scmp.lt.s32.totalorder %s274_s23, %s274_s23 }
   0xc   :  { %p281_p6 = por %p280_p5, %p279_p4 }
   0xe   :  { %p282_p7 = pnand %p281_p6, %p275_p3 }
  0x10   :  { %285 = shalt.err (!%p282_p7)
}
  0x11   :  { %19 = dma.hbm_to_vmem [thread:$0]  %s385_s0, 128, %s17_s13, [#allocation3]  }
  0x12   :  { %s286_s28 = scalar_lea.hbm %s386_s1, 256 }
  0x13   :  { %p287_p8 = scmp.ne.s32.totalorder %s386_s1, %s286_s28  ;;  %p290_p9 = scmp.lt.u32.totalorder %s286_s28, %s386_s1 }
  0x15   :  { %p292_p10 = pnand %p290_p9, %p287_p8 }
  0x17   :  { %295 = shalt.err (!%p292_p10)
}
  0x18   :  { %s296_s6 = scalar_lea.vmem %s340_s15, 256  ;;  %p301_p12 = scmp.lt.s32.totalorder %s340_s15, %s340_s15 }
  0x19   :  { %p297_p11 = scmp.ne.s32.totalorder %s340_s15, %s296_s6  ;;  %p302_p13 = scmp.lt.s32.totalorder %s296_s6, %s296_s6 }
  0x1b   :  { %p303_p0 = por %p302_p13, %p301_p12 }
  0x1d   :  { %p304_p1 = pnand %p303_p0, %p297_p11 }
  0x1f   :  { %307 = shalt.err (!%p304_p1)
}
  0x20   :  { %s314_s0 = smov 128   ;;  %s315_s7 = smov 8  }
  0x21   :  { %31 = dma.hbm_to_vmem [thread:$0]  %s386_s1, 256, %s340_s15, [#allocation5], %s314_s0, %s314_s0, %s315_s7  }
  0x22   :  { %308 = dma.done.wait [#allocation3], 128  }
  0x23   :  { %309 = vsyncadd [#allocation3], 4294967168 }
  0x24   :  { %310 = dma.done.wait [#allocation5], 256  }
  0x25   :  { %311 = vsyncadd [#allocation5], 4294967040  ;;  %v46_v0 = vld [vmem:[#allocation2] sm:$0xff]  ;;  %vm44_vm0 = vcmask 7168   ;;  %v316_v2 = vmov 0.0   ;;  %s317_s12 = smov 124  }
  0x26   :  { %v47_v1 = vmul.f32 1.4142135, %v46_v0  ;;  %45 = vst.msk [vmem:[%s388_s3] sm:$0xff] %vm44_vm0, %v316_v2  ;;  %240 = vmatprep.subr.mxu0 %v316_v2  ;;  %245 = vmatprep.subr.mxu1 %v316_v2  ;;  %v61_v4 = vld [vmem:[#allocation4] sm:$0xff]  ;;  %v139_v5 = vld [vmem:[#allocation4 + $0x8] sm:$0xff]  ;;  %vm318_vm1 = vmmov 0  }
  0x27   :  { %241 = vmatpush3.msra.mxu0 %v61_v4  ;;  %242 = vmatprep.mubr.msk.f32.mxu0 %vm318_vm1, %v316_v2  ;;  %s319_s1 = smov 4   ;;  %vm59_vm2 = vcmask 31744   ;;  %vm62_vm3 = vcmask 64512   ;;  %v235_v18 = vld [vmem:[%s387_s2] ss:$0 sm:$0xff] }
  0x28   :  { %258 = vrcp.f32 %v47_v1  ;;  %246 = vmatpush3.msra.mxu1 %v139_v5  ;;  %247 = vmatprep.mubr.msk.f32.mxu1 %vm318_vm1, %v316_v2 }
  0x2d   :  { %v213_v21 = vld [vmem:[%s388_s3] sm:$0xff] }
  0x32   :  { %v259_v3 = vpop.eup %258 }
  0x33   :  { %51 = vrot.lane.b32.xlu0 %v259_v3, %s317_s12 }
  0xa5   :  { %v52_v6 = vpop.permute.xlu0 %51 }
  0xa6   :  { %v54_v7 = vmul.f32 %v52_v6, %v46_v0 }
  0xa8   :  { %56 = vrot.lane.b32.xlu0 %v54_v7, %s319_s1 }
 0x11a   :  { %v57_v8 = vpop.permute.xlu0 %56 }
 0x11b   :  { %v60_v9 = vsel %vm59_vm2, %v52_v6, %v57_v8 }
 0x11c   :  { %243 = vmatmul.mubr.msk.f32.vlgmr.msra.gmra.mrb[0].mxu0 %vm62_vm3, %v60_v9  ;;  %248 = vmatmul.mubr.msk.f32.vlgmr.msra.gmra.mrb[0].mxu1 %vm62_vm3, %v60_v9 }
 0x1ef   :  { %v132_v10 = vpop.f32.mrb[0].mxu0  ;;  %v206_v11 = vpop.f32.mrb[0].mxu1 }
 0x1f0   :  { %260 = verf.f32 %v132_v10  ;;  %v244_v12 = vpop.f32.mrb[1].mxu0  ;;  %v249_v13 = vpop.f32.mrb[1].mxu1 }
 0x1f1   :  { %262 = verf.f32 %v206_v11 }
 0x1fa   :  { %v261_v14 = vpop.eup %260 }
 0x1fb   :  { %v263_v15 = vpop.eup %262  ;;  %v137_v16 = vadd.f32 1.0, %v261_v14 }
 0x1fc   :  { %v211_v17 = vadd.f32 1.0, %v263_v15 }
 0x1fe   :  { %v212_v19 = vmul.f32 %v211_v17, %v137_v16 }
 0x200   :  { %v221_v20 = vmul.f32 %v235_v18, %v212_v19 }
 0x202   :  { %222 = vadd.xlane.f32.xlu1 %v221_v20 }
 0x28f   :  { %v223_v22 = vpop.xlane.xlu1 %222 }
 0x290   :  { %v224_v23 = vadd.f32 %v223_v22, %v213_v21 }
 0x292   :  { %226 = vst.msk [vmem:[%s388_s3] sm:$0xff] %vm44_vm0, %v224_v23 }
 0x293   :  { %231 = vsyncpa [#allocation3], 1 }
 0x294   :  { %232 = vsyncpa [#allocation5], 1 }

// kernel: tpu_custom_call.1
= control target key start
LH: loop header
LB: loop body
LE: loop exit
PB: predicated region body
PF: predicated region fallthrough
CT: control target
= control target key end

     0   :  { %8 = vsyncpa [#allocation3], 0  ;;  %s385_s0 = inlined_call_operand.hbm [shape: f32[8,8], index: 0, kind: input, shape index: {}]   ;;  %s386_s1 = inlined_call_operand.hbm [shape: f32[2,8,128], index: 1, kind: input, shape index: {}]   ;;  %s387_s2 = inlined_call_operand.vmem [shape: f32[1,128], index: 2, kind: input, shape index: {}]   ;;  %s388_s3 = inlined_call_operand.vmem [shape: f32[8,1], index: 3, kind: output, shape index: {}]  }
   0x1   :  { %9 = vsyncpa [#allocation5], 0  ;;  %s312_s12 = smov [#allocation2]   ;;  %s313_s14 = smov [#allocation4]  }
   0x2   :  { %s16_s13 = sshll.u32 %s312_s12, 4  ;;  %s25_s15 = sshll.u32 %s313_s14, 4  ;;  %s17_s13 = int_to_ptr.vmem [resolvable:$true] %s16_s13  ;;  %s340_s15 = int_to_ptr.vmem [resolvable:$true] %s25_s15 }
   0x3   :  { %s264_s18 = scalar_lea.hbm %s385_s0, 128 }
   0x4   :  { %p265_p0 = scmp.ne.s32.totalorder %s385_s0, %s264_s18  ;;  %p268_p1 = scmp.lt.u32.totalorder %s264_s18, %s385_s0 }
   0x6   :  { %p270_p2 = pnand %p268_p1, %p265_p0 }
   0x8   :  { %273 = shalt.err (!%p270_p2)
}
   0x9   :  { %s274_s23 = scalar_lea.vmem %s17_s13, 128  ;;  %p279_p4 = scmp.lt.s32.totalorder %s17_s13, %s17_s13 }
   0xa   :  { %p275_p3 = scmp.ne.s32.totalorder %s17_s13, %s274_s23  ;;  %p280_p5 = scmp.lt.s32.totalorder %s274_s23, %s274_s23 }
   0xc   :  { %p281_p6 = por %p280_p5, %p279_p4 }
   0xe   :  { %p282_p7 = pnand %p281_p6, %p275_p3 }
  0x10   :  { %285 = shalt.err (!%p282_p7)
}
  0x11   :  { %19 = dma.hbm_to_vmem [thread:$0]  %s385_s0, 128, %s17_s13, [#allocation3]  }
  0x12   :  { %s286_s28 = scalar_lea.hbm %s386_s1, 256 }
  0x13   :  { %p287_p8 = scmp.ne.s32.totalorder %s386_s1, %s286_s28  ;;  %p290_p9 = scmp.lt.u32.totalorder %s286_s28, %s386_s1 }
  0x15   :  { %p292_p10 = pnand %p290_p9, %p287_p8 }
  0x17   :  { %295 = shalt.err (!%p292_p10)
}
  0x18   :  { %s296_s6 = scalar_lea.vmem %s340_s15, 256  ;;  %p301_p12 = scmp.lt.s32.totalorder %s340_s15, %s340_s15 }
  0x19   :  { %p297_p11 = scmp.ne.s32.totalorder %s340_s15, %s296_s6  ;;  %p302_p13 = scmp.lt.s32.totalorder %s296_s6, %s296_s6 }
  0x1b   :  { %p303_p0 = por %p302_p13, %p301_p12 }
  0x1d   :  { %p304_p1 = pnand %p303_p0, %p297_p11 }
  0x1f   :  { %307 = shalt.err (!%p304_p1)
}
  0x20   :  { %s314_s0 = smov 128   ;;  %s315_s7 = smov 8  }
  0x21   :  { %31 = dma.hbm_to_vmem [thread:$0]  %s386_s1, 256, %s340_s15, [#allocation5], %s314_s0, %s314_s0, %s315_s7  }
  0x22   :  { %308 = dma.done.wait [#allocation3], 128  }
  0x23   :  { %309 = vsyncadd [#allocation3], 4294967168 }
  0x24   :  { %310 = dma.done.wait [#allocation5], 256  }
  0x25   :  { %311 = vsyncadd [#allocation5], 4294967040  ;;  %v46_v0 = vld [vmem:[#allocation2] sm:$0xff]  ;;  %vm44_vm0 = vcmask 7168   ;;  %v316_v2 = vmov 0.0   ;;  %s317_s12 = smov 124  }
  0x26   :  { %v47_v1 = vmul.f32 1.4142135, %v46_v0  ;;  %45 = vst.msk [vmem:[%s388_s3] sm:$0xff] %vm44_vm0, %v316_v2  ;;  %240 = vmatprep.subr.mxu0 %v316_v2  ;;  %245 = vmatprep.subr.mxu1 %v316_v2  ;;  %v61_v4 = vld [vmem:[#allocation4] sm:$0xff]  ;;  %v139_v5 = vld [vmem:[#allocation4 + $0x8] sm:$0xff]  ;;  %vm318_vm1 = vmmov 0  }
  0x27   :  { %241 = vmatpush3.msra.mxu0 %v61_v4  ;;  %242 = vmatprep.mubr.msk.f32.mxu0 %vm318_vm1, %v316_v2  ;;  %s319_s1 = smov 4   ;;  %vm59_vm2 = vcmask 31744   ;;  %vm62_vm3 = vcmask 64512   ;;  %v235_v18 = vld [vmem:[%s387_s2] ss:$0 sm:$0xff] }
  0x28   :  { %258 = vrcp.f32 %v47_v1  ;;  %246 = vmatpush3.msra.mxu1 %v139_v5  ;;  %247 = vmatprep.mubr.msk.f32.mxu1 %vm318_vm1, %v316_v2 }
  0x2d   :  { %v213_v21 = vld [vmem:[%s388_s3] sm:$0xff] }
  0x32   :  { %v259_v3 = vpop.eup %258 }
  0x33   :  { %51 = vrot.lane.b32.xlu0 %v259_v3, %s317_s12 }
  0xa5   :  { %v52_v6 = vpop.permute.xlu0 %51 }
  0xa6   :  { %v54_v7 = vmul.f32 %v52_v6, %v46_v0 }
  0xa8   :  { %56 = vrot.lane.b32.xlu0 %v54_v7, %s319_s1 }
 0x11a   :  { %v57_v8 = vpop.permute.xlu0 %56 }
 0x11b   :  { %v60_v9 = vsel %vm59_vm2, %v52_v6, %v57_v8 }
 0x11c   :  { %243 = vmatmul.mubr.msk.f32.vlgmr.msra.gmra.mrb[0].mxu0 %vm62_vm3, %v60_v9  ;;  %248 = vmatmul.mubr.msk.f32.vlgmr.msra.gmra.mrb[0].mxu1 %vm62_vm3, %v60_v9 }
 0x1ef   :  { %v132_v10 = vpop.f32.mrb[0].mxu0  ;;  %v206_v11 = vpop.f32.mrb[0].mxu1 }
 0x1f0   :  { %260 = verf.f32 %v132_v10  ;;  %v244_v12 = vpop.f32.mrb[1].mxu0  ;;  %v249_v13 = vpop.f32.mrb[1].mxu1 }
 0x1f1   :  { %262 = verf.f32 %v206_v11 }
 0x1fa   :  { %v261_v14 = vpop.eup %260 }
 0x1fb   :  { %v263_v15 = vpop.eup %262  ;;  %v137_v16 = vadd.f32 1.0, %v261_v14 }
 0x1fc   :  { %v211_v17 = vadd.f32 1.0, %v263_v15 }
 0x1fe   :  { %v212_v19 = vmul.f32 %v211_v17, %v137_v16 }
 0x200   :  { %v221_v20 = vmul.f32 %v235_v18, %v212_v19 }
 0x202   :  { %222 = vadd.xlane.f32.xlu1 %v221_v20 }
 0x28f   :  { %v223_v22 = vpop.xlane.xlu1 %222 }
 0x290   :  { %v224_v23 = vadd.f32 %v223_v22, %v213_v21 }
 0x292   :  { %226 = vst.msk [vmem:[%s388_s3] sm:$0xff] %vm44_vm0, %v224_v23 }
 0x293   :  { %231 = vsyncpa [#allocation3], 1 }
 0x294   :  { %232 = vsyncpa [#allocation5], 1 }

// kernel: tpu_custom_call.1
= control target key start
LH: loop header
LB: loop body
LE: loop exit
PB: predicated region body
PF: predicated region fallthrough
CT: control target
= control target key end

     0   :  { %8 = vsyncpa [#allocation3], 0  ;;  %s566_s0 = inlined_call_operand.hbm [shape: f32[8,8], index: 0, kind: input, shape index: {}]   ;;  %s567_s1 = inlined_call_operand.hbm [shape: f32[2,8,128], index: 1, kind: input, shape index: {}]   ;;  %s568_s2 = inlined_call_operand.vmem [shape: f32[1,128], index: 2, kind: input, shape index: {}]   ;;  %s569_s3 = inlined_call_operand.vmem [shape: f32[8,1], index: 3, kind: output, shape index: {}]  }
   0x1   :  { %9 = vsyncpa [#allocation5], 0  ;;  %s486_s12 = smov [#allocation2]   ;;  %s487_s14 = smov [#allocation4]  }
   0x2   :  { %s16_s13 = sshll.u32 %s486_s12, 4  ;;  %s25_s15 = sshll.u32 %s487_s14, 4  ;;  %s17_s13 = int_to_ptr.vmem [resolvable:$true] %s16_s13  ;;  %s513_s15 = int_to_ptr.vmem [resolvable:$true] %s25_s15 }
   0x3   :  { %s438_s18 = scalar_lea.hbm %s566_s0, 128 }
   0x4   :  { %p439_p0 = scmp.ne.s32.totalorder %s566_s0, %s438_s18  ;;  %p442_p1 = scmp.lt.u32.totalorder %s438_s18, %s566_s0 }
   0x6   :  { %p444_p2 = pnand %p442_p1, %p439_p0 }
   0x8   :  { %447 = shalt.err (!%p444_p2)
}
   0x9   :  { %s448_s23 = scalar_lea.vmem %s17_s13, 128  ;;  %p453_p4 = scmp.lt.s32.totalorder %s17_s13, %s17_s13 }
   0xa   :  { %p449_p3 = scmp.ne.s32.totalorder %s17_s13, %s448_s23  ;;  %p454_p5 = scmp.lt.s32.totalorder %s448_s23, %s448_s23 }
   0xc   :  { %p455_p6 = por %p454_p5, %p453_p4 }
   0xe   :  { %p456_p7 = pnand %p455_p6, %p449_p3 }
  0x10   :  { %459 = shalt.err (!%p456_p7)
}
  0x11   :  { %19 = dma.hbm_to_vmem [thread:$0]  %s566_s0, 128, %s17_s13, [#allocation3]  }
  0x12   :  { %s460_s28 = scalar_lea.hbm %s567_s1, 256 }
  0x13   :  { %p461_p8 = scmp.ne.s32.totalorder %s567_s1, %s460_s28  ;;  %p464_p9 = scmp.lt.u32.totalorder %s460_s28, %s567_s1 }
  0x15   :  { %p466_p10 = pnand %p464_p9, %p461_p8 }
  0x17   :  { %469 = shalt.err (!%p466_p10)
}
  0x18   :  { %s470_s6 = scalar_lea.vmem %s513_s15, 256  ;;  %p475_p12 = scmp.lt.s32.totalorder %s513_s15, %s513_s15 }
  0x19   :  { %p471_p11 = scmp.ne.s32.totalorder %s513_s15, %s470_s6  ;;  %p476_p13 = scmp.lt.s32.totalorder %s470_s6, %s470_s6 }
  0x1b   :  { %p477_p0 = por %p476_p13, %p475_p12 }
  0x1d   :  { %p478_p1 = pnand %p477_p0, %p471_p11 }
  0x1f   :  { %481 = shalt.err (!%p478_p1)
}
  0x20   :  { %s488_s0 = smov 128   ;;  %s489_s7 = smov 8  }
  0x21   :  { %31 = dma.hbm_to_vmem [thread:$0]  %s567_s1, 256, %s513_s15, [#allocation5], %s488_s0, %s488_s0, %s489_s7  }
  0x22   :  { %482 = dma.done.wait [#allocation3], 128  }
  0x23   :  { %483 = vsyncadd [#allocation3], 4294967168 }
  0x24   :  { %484 = dma.done.wait [#allocation5], 256  }
  0x25   :  { %485 = vsyncadd [#allocation5], 4294967040  ;;  %v490_v0 = vmov 0.0   ;;  %v46_v1 = vld [vmem:[#allocation2] sm:$0xff]  ;;  %v56_v3 = vld [vmem:[#allocation4 + $0x4] sm:$0xf] }
  0x26   :  { %401 = vmatprep.subr.mxu0 %v490_v0  ;;  %411 = vmatprep.subr.mxu1 %v490_v0  ;;  %v47_v2 = vmul.f32 1.4142135, %v46_v1  ;;  %vm61_vm0 = vcmask 1043456   ;;  %v214_v4 = vld [vmem:[#allocation4 + $0xc] sm:$0xf]  ;;  %vm491_vm1 = vmmov 0  }
  0x27   :  { %402 = vmatpush3.msk.msra.mxu0 %vm61_vm0, %v56_v3  ;;  %403 = vmatprep.mubr.msk.f32.mxu0 %vm491_vm1, %v490_v0  ;;  %s492_s1 = smov 124   ;;  %vm57_vm2 = vcmask 31744   ;;  %v55_v8 = vld [vmem:[#allocation4] sm:$0xf]  ;;  %v213_v9 = vld [vmem:[#allocation4 + $0x8] sm:$0xf] }
  0x28   :  { %432 = vrcp.f32 %v47_v2  ;;  %412 = vmatpush3.msk.msra.mxu1 %vm61_vm0, %v214_v4  ;;  %406 = vmatprep.subr.mxu0 %v490_v0  ;;  %vm44_vm3 = vcmask 7168   ;;  %v392_v18 = vld [vmem:[%s568_s2] ss:$0 sm:$0xff] }
  0x29   :  { %413 = vmatprep.mubr.msk.f32.mxu1 %vm491_vm1, %v490_v0  ;;  %416 = vmatprep.subr.mxu1 %v490_v0  ;;  %45 = vst.msk [vmem:[%s569_s3] sm:$0xff] %vm44_vm3, %v490_v0 }
  0x30   :  { %v364_v21 = vld [vmem:[%s569_s3] sm:$0xff] }
  0x32   :  { %v433_v5 = vpop.eup %432 }
  0x33   :  { %51 = vrot.lane.b32.xlu0 %v433_v5, %s492_s1 }
  0xa5   :  { %v52_v6 = vpop.permute.xlu0 %51 }
  0xa6   :  { %v54_v7 = vmul.f32 %v52_v6, %v46_v1 }
  0xa8   :  { %404 = vmatmul.mubr.msk.f32.vlgmr.msra.gmra.mrb[0].mxu0 %vm57_vm2, %v54_v7  ;;  %414 = vmatmul.mubr.msk.f32.vlgmr.msra.gmra.mrb[0].mxu1 %vm57_vm2, %v54_v7 }
  0xa9   :  { %407 = vmatpush3.msk.msra.mxu0 %vm61_vm0, %v55_v8  ;;  %417 = vmatpush3.msk.msra.mxu1 %vm61_vm0, %v213_v9 }
  0xaa   :  { %408 = vmatprep.mubr.msk.f32.mxu0 %vm491_vm1, %v490_v0  ;;  %418 = vmatprep.mubr.msk.f32.mxu1 %vm491_vm1, %v490_v0 }
  0xb0   :  { %409 = vmatmul.mubr.msk.f32.vlgmr.msra.gmra.mrb[0].mxu0 %vm57_vm2, %v52_v6  ;;  %419 = vmatmul.mubr.msk.f32.vlgmr.msra.gmra.mrb[0].mxu1 %vm57_vm2, %v52_v6 }
 0x183   :  { %v206_v10 = vpop.f32.mrb[0].mxu0  ;;  %v357_v11 = vpop.f32.mrb[0].mxu1 }
 0x184   :  { %434 = verf.f32 %v206_v10  ;;  %v410_v12 = vpop.f32.mrb[1].mxu0  ;;  %v420_v13 = vpop.f32.mrb[1].mxu1 }
 0x185   :  { %436 = verf.f32 %v357_v11 }
 0x18e   :  { %v435_v14 = vpop.eup %434 }
 0x18f   :  { %v437_v15 = vpop.eup %436  ;;  %v211_v16 = vadd.f32 1.0, %v435_v14 }
 0x190   :  { %v362_v17 = vadd.f32 1.0, %v437_v15 }
 0x192   :  { %v363_v19 = vmul.f32 %v362_v17, %v211_v16 }
 0x194   :  { %v372_v20 = vmul.f32 %v392_v18, %v363_v19 }
 0x196   :  { %373 = vadd.xlane.f32.xlu0 %v372_v20 }
 0x223   :  { %v374_v22 = vpop.xlane.xlu0 %373 }
 0x224   :  { %v375_v23 = vadd.f32 %v374_v22, %v364_v21 }
 0x226   :  { %377 = vst.msk [vmem:[%s569_s3] sm:$0xff] %vm44_vm3, %v375_v23 }
 0x227   :  { %382 = vsyncpa [#allocation3], 1 }
 0x228   :  { %383 = vsyncpa [#allocation5], 1 }

</bundles_post_ra>
